<compile_context>
chip_gen: v7x
topology: tpu7x:2x2x1
jax: 0.10.0
libtpu: 0.0.40
codegen_flags: <defaults>
</compile_context>

<pallas_src>
import math
import functools

import jax
import jax.numpy as jnp
from jax import lax
from jax.experimental import pallas as pl
from jax.experimental.pallas import tpu as pltpu


def mhsa_kernel(x_ref, wq_ref, bq_ref, wkv_ref, bkv_ref, wo_ref, bo_ref,
                o_ref, kv_ref, *, num_heads, head_dim, scale, q_tile):
    """One grid step = (one batch element, one tile of q_tile query rows).

    x_ref  : (1, S, E)   full sequence for this batch element (block constant
                         across q tiles -> DMA'd once per batch element)
    wq_ref : (E, E)      bq_ref : (1, E)
    wkv_ref: (E, 2E)     bkv_ref: (1, 2E)     (K | V fused)
    wo_ref : (E, E)      bo_ref : (1, E)
    o_ref  : (1, tq, E)
    kv_ref : (S, 2E) VMEM scratch in the compute (input) dtype, filled once per
             batch element at q-tile index 0 and reused by the remaining tiles.
    """
    embed_dim = num_heads * head_dim
    qi = pl.program_id(1)
    cdt = kv_ref.dtype                      # compute dtype for attention matmuls

    # ---- K|V projection: once per batch element, cached in VMEM scratch ----
    @pl.when(qi == 0)
    def _():
        xs = x_ref[0]                                               # (S, E)
        kv = jnp.dot(xs, wkv_ref[...], preferred_element_type=jnp.float32)
        kv_ref[...] = (kv + bkv_ref[...]).astype(cdt)               # (S, 2E)

    # ---- Q projection on this query-row tile only (scale folded in once) ----
    row0 = pl.multiple_of(qi * q_tile, q_tile)
    xq = x_ref[0, pl.ds(row0, q_tile), :]                           # (tq, E)
    q = (jnp.dot(xq, wq_ref[...], preferred_element_type=jnp.float32)
         + bq_ref[...]) * scale
    q = q.astype(cdt)                                               # (tq, E)

    k = kv_ref[:, :embed_dim]                                       # (S, E) cdt
    v = kv_ref[:, embed_dim:]                                       # (S, E) cdt
    wo = wo_ref[...]                                                # hoisted

    # Single wide K=E output-projection matmul when head slices are 128-lane
    # aligned; otherwise fall back to the per-head fused accumulation.
    fused_epilogue = (head_dim % 128 == 0)
    ctx_heads = []
    acc = None if fused_epilogue else jnp.zeros((q_tile, embed_dim), jnp.float32)

    for h in range(num_heads):                 # static unroll; fine for small H
        lo = h * head_dim
        qh = q[:, lo:lo + head_dim]                                  # (tq, Dh)
        kh = k[:, lo:lo + head_dim]                                  # (S,  Dh)
        vh = v[:, lo:lo + head_dim]                                  # (S,  Dh)

        # q @ k^T without an explicit transpose: contract last dims of both.
        scores = lax.dot_general(qh, kh, (((1,), (1,)), ((), ())),
                                 preferred_element_type=jnp.float32)  # (tq, S)

        m = jnp.max(scores, axis=-1, keepdims=True)
        p = jnp.exp(scores - m)                                       # f32
        denom = jnp.sum(p, axis=-1, keepdims=True)                    # (tq, 1)

        # Un-normalized PV matmul in the compute dtype; normalize the small
        # (tq, Dh) context afterwards (S/Dh fewer VPU multiplies than scaling p).
        ctx_h = jnp.dot(p.astype(cdt), vh, preferred_element_type=jnp.float32)
        ctx_h = ctx_h * pl.reciprocal(denom, approx=False)            # (tq, Dh)

        if fused_epilogue:
            ctx_heads.append(ctx_h.astype(wo.dtype))
        else:
            # Output projection folded into the head loop (no concat copy,
            # bounded live ranges) — algebraically identical to concat+matmul.
            acc = acc + jnp.dot(ctx_h.astype(wo.dtype), wo[lo:lo + head_dim, :],
                                preferred_element_type=jnp.float32)   # (tq, E)

    if fused_epilogue:
        ctx = jnp.concatenate(ctx_heads, axis=-1)                     # (tq, E)
        acc = jnp.dot(ctx, wo, preferred_element_type=jnp.float32)

    o_ref[0] = (acc + bo_ref[...]).astype(o_ref.dtype)


def _pick_q_tile(seq_len, target=256):
    if seq_len <= target:
        return seq_len
    for t in (256, 128, 64, 32, 16, 8):
        if t <= target and seq_len % t == 0:
            return t
    return seq_len


def multi_head_self_attention(x, params, *, num_heads, q_tile_target=256):
    """x: (B, S, E). params: wq,bq,wk,bk,wv,bv,wo,bo with W stored as (in, out).
    Matches MultiHeadSelfAttention.forward with mask=None, dropout=0.0."""
    B, S, E = x.shape
    assert E % num_heads == 0, "embed_dim must be divisible by num_heads"
    head_dim = E // num_heads
    scale = 1.0 / math.sqrt(head_dim)

    # Host-side fusion of K and V projection weights -> one (E, 2E) MXU pass.
    wkv = jnp.concatenate([params["wk"], params["wv"]], axis=1)   # (E, 2E)
    bkv = jnp.concatenate([params["bk"], params["bv"]], axis=1)   # (1, 2E)

    tq = _pick_q_tile(S, q_tile_target)
    n_q_tiles = S // tq

    const = lambda b, qi: (0, 0)
    # Constant index_map + single pipeline buffer: weights/biases are fetched
    # once and never pay for a second (useless) pipeline buffer.
    wspec = lambda shape: pl.BlockSpec(shape, const, pipeline_mode=pl.Buffered(1))

    in_specs = [
        pl.BlockSpec((1, S, E), lambda b, qi: (b, 0, 0)),  # x (q rows sliced in-kernel)
        wspec((E, E)),        # wq
        wspec((1, E)),        # bq
        wspec((E, 2 * E)),    # wkv (fused)
        wspec((1, 2 * E)),    # bkv (fused)
        wspec((E, E)),        # wo
        wspec((1, E)),        # bo
    ]
    out_spec = pl.BlockSpec((1, tq, E), lambda b, qi: (b, qi, 0))

    kernel = functools.partial(mhsa_kernel, num_heads=num_heads,
                               head_dim=head_dim, scale=scale, q_tile=tq)

    return pl.pallas_call(
        kernel,
        out_shape=jax.ShapeDtypeStruct((B, S, E), x.dtype),
        grid_spec=pltpu.PrefetchScalarGridSpec(
            num_scalar_prefetch=0,
            grid=(B, n_q_tiles),
            in_specs=in_specs,
            out_specs=out_spec,
            # K|V cache in the input dtype: halves the scratch footprint for
            # bf16 inputs (important on v7x's 64 MiB VMEM).
            scratch_shapes=[pltpu.VMEM((S, 2 * E), x.dtype)],
        ),
        compiler_params=pltpu.CompilerParams(
            # Batch stays "parallel" (megacore-shardable on v7x); the q-tile
            # axis must be "arbitrary" so the per-batch KV scratch reuse is legal.
            dimension_semantics=("parallel", "arbitrary"),
            # 48 MiB: above the 16/32 MiB scoped defaults (v5e / v6e) yet
            # inside v7x's 64 MiB physical VMEM.
            vmem_limit_bytes=48 * 1024 * 1024,
        ),
    )(x, params["wq"], params["bq"], wkv, bkv, params["wo"], params["bo"])


def reference_mhsa(x, params, *, num_heads):
    """Plain-JAX reference mirroring the PyTorch forward (mask=None, dropout=0)."""
    B, S, E = x.shape
    Dh = E // num_heads
    q = x @ params["wq"] + params["bq"]
    k = x @ params["wk"] + params["bk"]
    v = x @ params["wv"] + params["bv"]
    q = q.reshape(B, S, num_heads, Dh).transpose(0, 2, 1, 3)
    k = k.reshape(B, S, num_heads, Dh).transpose(0, 2, 1, 3)
    v = v.reshape(B, S, num_heads, Dh).transpose(0, 2, 1, 3)
    scores = jnp.einsum("bhqd,bhkd->bhqk", q, k) / math.sqrt(Dh)
    attn = jax.nn.softmax(scores, axis=-1)
    out = jnp.einsum("bhqk,bhkd->bhqd", attn, v)
    out = out.transpose(0, 2, 1, 3).reshape(B, S, E)
    return out @ params["wo"] + params["bo"]


if __name__ == "__main__":
    # Small shapes consistent with the module: batch=2, seq=8, embed=32, heads=4.
    B, S, E, H = 2, 8, 32, 4

    key = jax.random.PRNGKey(0)
    keys = jax.random.split(key, 9)

    # nn.Linear-equivalent parameters, weights stored transposed as (in, out)
    # so the kernel computes x @ W + b.
    init = 1.0 / math.sqrt(E)
    params = {
        "wq": jax.random.uniform(keys[0], (E, E), jnp.float32, -init, init),
        "bq": jax.random.uniform(keys[1], (1, E), jnp.float32, -init, init),
        "wk": jax.random.uniform(keys[2], (E, E), jnp.float32, -init, init),
        "bk": jax.random.uniform(keys[3], (1, E), jnp.float32, -init, init),
        "wv": jax.random.uniform(keys[4], (E, E), jnp.float32, -init, init),
        "bv": jax.random.uniform(keys[5], (1, E), jnp.float32, -init, init),
        "wo": jax.random.uniform(keys[6], (E, E), jnp.float32, -init, init),
        "bo": jax.random.uniform(keys[7], (1, E), jnp.float32, -init, init),
    }

    x = jax.random.normal(keys[8], (B, S, E), jnp.float32)

    out = multi_head_self_attention(x, params, num_heads=H)
    out = jax.block_until_ready(out)

    ref = reference_mhsa(x, params, num_heads=H)
    assert out.shape == (B, S, E)
    assert jnp.allclose(out, ref, atol=1e-3, rtol=1e-3), \
        f"max abs err = {jnp.max(jnp.abs(out - ref))}"

    print("KERNEL_OK")
</pallas_src>

<mosaic_0001>
module attributes {stable_mosaic.version = 11 : i64} {
  func.func @mhsa_kernel(%arg0: i32, %arg1: i32, %arg2: memref<1x8x32xf32, #tpu.memory_space<vmem>>, %arg3: memref<32x32xf32, #tpu.memory_space<vmem>>, %arg4: memref<1x32xf32, #tpu.memory_space<vmem>>, %arg5: memref<32x64xf32, #tpu.memory_space<vmem>>, %arg6: memref<1x64xf32, #tpu.memory_space<vmem>>, %arg7: memref<32x32xf32, #tpu.memory_space<vmem>>, %arg8: memref<1x32xf32, #tpu.memory_space<vmem>>, %arg9: memref<1x8x32xf32, #tpu.memory_space<vmem>>, %arg10: memref<8x64xf32, #tpu.memory_space<vmem>>) attributes {dimension_semantics = [#tpu.dimension_semantics<parallel>, #tpu.dimension_semantics<arbitrary>], iteration_bounds = array<i64: 2, 1>, scalar_prefetch = 0 : i64, scratch_operands = 1 : i64, tpu.core_type = #tpu.core_type<tc>, window_params = [{transform_indices = @transform_0, window_bounds = array<i64: 1, 8, 32>}, {pipeline_mode = #tpu.pipeline_mode<synchronous>, transform_indices = @transform_1, window_bounds = array<i64: 32, 32>}, {pipeline_mode = #tpu.pipeline_mode<synchronous>, transform_indices = @transform_2, window_bounds = array<i64: 1, 32>}, {pipeline_mode = #tpu.pipeline_mode<synchronous>, transform_indices = @transform_3, window_bounds = array<i64: 32, 64>}, {pipeline_mode = #tpu.pipeline_mode<synchronous>, transform_indices = @transform_4, window_bounds = array<i64: 1, 64>}, {pipeline_mode = #tpu.pipeline_mode<synchronous>, transform_indices = @transform_5, window_bounds = array<i64: 32, 32>}, {pipeline_mode = #tpu.pipeline_mode<synchronous>, transform_indices = @transform_6, window_bounds = array<i64: 1, 32>}, {transform_indices = @transform_7, window_bounds = array<i64: 1, 8, 32>}]} {
    %c0_i32 = arith.constant 0 : i32
    %0 = arith.cmpi eq, %arg1, %c0_i32 : i32
    %1 = arith.extui %0 : i1 to i32
    %c0_i32_0 = arith.constant 0 : i32
    %2 = arith.cmpi ne, %1, %c0_i32_0 : i32
    scf.if %2 {
      %c0_38 = arith.constant 0 : index
      %c0_39 = arith.constant 0 : index
      %c0_40 = arith.constant 0 : index
      %97 = vector.load %arg2[%c0_38, %c0_39, %c0_40] : memref<1x8x32xf32, #tpu.memory_space<vmem>>, vector<1x8x32xf32>
      %98 = vector.shape_cast %97 : vector<1x8x32xf32> to vector<8x32xf32>
      %c0_41 = arith.constant 0 : index
      %c0_42 = arith.constant 0 : index
      %99 = vector.load %arg5[%c0_41, %c0_42] : memref<32x64xf32, #tpu.memory_space<vmem>>, vector<32x64xf32>
      %cst_43 = arith.constant dense<0.000000e+00> : vector<8x64xf32>
      %100 = tpu.matmul %98, %99, %cst_43 {dimension_numbers = #tpu.dot_dimension_numbers<[1], [0], [0], [1], [0, 0, 1, 1], [], []>} : vector<8x32xf32>, vector<32x64xf32>, vector<8x64xf32> -> vector<8x64xf32>
      %c0_44 = arith.constant 0 : index
      %c0_45 = arith.constant 0 : index
      %101 = vector.load %arg6[%c0_44, %c0_45] : memref<1x64xf32, #tpu.memory_space<vmem>>, vector<1x64xf32>
      %102 = vector.broadcast %101 : vector<1x64xf32> to vector<8x64xf32>
      %103 = arith.addf %100, %102 : vector<8x64xf32>
      %c0_46 = arith.constant 0 : index
      %c0_47 = arith.constant 0 : index
      %104 = vector.load %arg10[%c0_46, %c0_47] : memref<8x64xf32, #tpu.memory_space<vmem>>, vector<8x64xf32>
      tpu.vector_store %arg10[%c0_46, %c0_47], %103 {strides = array<i32>} : memref<8x64xf32, #tpu.memory_space<vmem>>, vector<8x64xf32>,
    } else {
    }
    %c8_i32 = arith.constant 8 : i32
    %3 = arith.muli %arg1, %c8_i32 : i32
    %4 = tpu.assume_multiple %3, 8 : i32
    %c0 = arith.constant 0 : index
    %5 = arith.index_cast %4 : i32 to index
    %c0_1 = arith.constant 0 : index
    %6 = vector.load %arg2[%c0, %5, %c0_1] : memref<1x8x32xf32, #tpu.memory_space<vmem>>, vector<1x8x32xf32>
    %7 = vector.shape_cast %6 : vector<1x8x32xf32> to vector<8x32xf32>
    %c0_2 = arith.constant 0 : index
    %c0_3 = arith.constant 0 : index
    %8 = vector.load %arg3[%c0_2, %c0_3] : memref<32x32xf32, #tpu.memory_space<vmem>>, vector<32x32xf32>
    %cst = arith.constant dense<0.000000e+00> : vector<8x32xf32>
    %9 = tpu.matmul %7, %8, %cst {dimension_numbers = #tpu.dot_dimension_numbers<[1], [0], [0], [1], [0, 0, 1, 1], [], []>} : vector<8x32xf32>, vector<32x32xf32>, vector<8x32xf32> -> vector<8x32xf32>
    %c0_4 = arith.constant 0 : index
    %c0_5 = arith.constant 0 : index
    %10 = vector.load %arg4[%c0_4, %c0_5] : memref<1x32xf32, #tpu.memory_space<vmem>>, vector<1x32xf32>
    %11 = vector.broadcast %10 : vector<1x32xf32> to vector<8x32xf32>
    %12 = arith.addf %9, %11 : vector<8x32xf32>
    %cst_6 = arith.constant 0.353553385 : f32
    %13 = vector.broadcast %cst_6 : f32 to vector<8x32xf32>
    %14 = arith.mulf %12, %13 : vector<8x32xf32>
    %c0_7 = arith.constant 0 : index
    %c0_8 = arith.constant 0 : index
    %15 = vector.load %arg10[%c0_7, %c0_8] : memref<8x64xf32, #tpu.memory_space<vmem>>, vector<8x32xf32>
    %c0_9 = arith.constant 0 : index
    %c32 = arith.constant 32 : index
    %16 = vector.load %arg10[%c0_9, %c32] : memref<8x64xf32, #tpu.memory_space<vmem>>, vector<8x32xf32>
    %c0_10 = arith.constant 0 : index
    %c0_11 = arith.constant 0 : index
    %17 = vector.load %arg7[%c0_10, %c0_11] : memref<32x32xf32, #tpu.memory_space<vmem>>, vector<32x32xf32>
    %cst_12 = arith.constant 0.000000e+00 : f32
    %18 = vector.broadcast %cst_12 : f32 to vector<8x32xf32>
    %19 = vector.extract_strided_slice %14 {offsets = [0, 0], sizes = [8, 8], strides = [1, 1]} : vector<8x32xf32> to vector<8x8xf32>
    %20 = vector.extract_strided_slice %15 {offsets = [0, 0], sizes = [8, 8], strides = [1, 1]} : vector<8x32xf32> to vector<8x8xf32>
    %21 = vector.extract_strided_slice %16 {offsets = [0, 0], sizes = [8, 8], strides = [1, 1]} : vector<8x32xf32> to vector<8x8xf32>
    %cst_13 = arith.constant dense<0.000000e+00> : vector<8x8xf32>
    %22 = tpu.matmul %19, %20, %cst_13 {dimension_numbers = #tpu.dot_dimension_numbers<[1], [1], [0], [0], [0, 0, 1, 0], [], []>} : vector<8x8xf32>, vector<8x8xf32>, vector<8x8xf32> -> vector<8x8xf32>
    %cst_14 = arith.constant dense<0xFF800000> : vector<8xf32>
    %23 = vector.multi_reduction <maximumf>, %22, %cst_14 [1] : vector<8x8xf32> to vector<8xf32>
    %24 = vector.shape_cast %23 : vector<8xf32> to vector<8x1xf32>
    %25 = vector.broadcast %24 : vector<8x1xf32> to vector<8x8xf32>
    %26 = arith.subf %22, %25 : vector<8x8xf32>
    %27 = math.exp %26 : vector<8x8xf32>
    %cst_15 = arith.constant dense<0.000000e+00> : vector<8xf32>
    %28 = vector.multi_reduction <add>, %27, %cst_15 [1] : vector<8x8xf32> to vector<8xf32>
    %29 = vector.shape_cast %28 : vector<8xf32> to vector<8x1xf32>
    %cst_16 = arith.constant dense<0.000000e+00> : vector<8x8xf32>
    %30 = tpu.matmul %27, %21, %cst_16 {dimension_numbers = #tpu.dot_dimension_numbers<[1], [0], [0], [1], [0, 0, 1, 1], [], []>} : vector<8x8xf32>, vector<8x8xf32>, vector<8x8xf32> -> vector<8x8xf32>
    %31 = tpu.reciprocal %29 : vector<8x1xf32> -> vector<8x1xf32>
    %32 = vector.broadcast %31 : vector<8x1xf32> to vector<8x8xf32>
    %33 = arith.mulf %30, %32 : vector<8x8xf32>
    %34 = vector.extract_strided_slice %17 {offsets = [0, 0], sizes = [8, 32], strides = [1, 1]} : vector<32x32xf32> to vector<8x32xf32>
    %cst_17 = arith.constant dense<0.000000e+00> : vector<8x32xf32>
    %35 = tpu.matmul %33, %34, %cst_17 {dimension_numbers = #tpu.dot_dimension_numbers<[1], [0], [0], [1], [0, 0, 1, 1], [], []>} : vector<8x8xf32>, vector<8x32xf32>, vector<8x32xf32> -> vector<8x32xf32>
    %36 = arith.addf %18, %35 : vector<8x32xf32>
    %37 = vector.extract_strided_slice %14 {offsets = [0, 8], sizes = [8, 8], strides = [1, 1]} : vector<8x32xf32> to vector<8x8xf32>
    %38 = vector.extract_strided_slice %15 {offsets = [0, 8], sizes = [8, 8], strides = [1, 1]} : vector<8x32xf32> to vector<8x8xf32>
    %39 = vector.extract_strided_slice %16 {offsets = [0, 8], sizes = [8, 8], strides = [1, 1]} : vector<8x32xf32> to vector<8x8xf32>
    %cst_18 = arith.constant dense<0.000000e+00> : vector<8x8xf32>
    %40 = tpu.matmul %37, %38, %cst_18 {dimension_numbers = #tpu.dot_dimension_numbers<[1], [1], [0], [0], [0, 0, 1, 0], [], []>} : vector<8x8xf32>, vector<8x8xf32>, vector<8x8xf32> -> vector<8x8xf32>
    %cst_19 = arith.constant dense<0xFF800000> : vector<8xf32>
    %41 = vector.multi_reduction <maximumf>, %40, %cst_19 [1] : vector<8x8xf32> to vector<8xf32>
    %42 = vector.shape_cast %41 : vector<8xf32> to vector<8x1xf32>
    %43 = vector.broadcast %42 : vector<8x1xf32> to vector<8x8xf32>
    %44 = arith.subf %40, %43 : vector<8x8xf32>
    %45 = math.exp %44 : vector<8x8xf32>
    %cst_20 = arith.constant dense<0.000000e+00> : vector<8xf32>
    %46 = vector.multi_reduction <add>, %45, %cst_20 [1] : vector<8x8xf32> to vector<8xf32>
    %47 = vector.shape_cast %46 : vector<8xf32> to vector<8x1xf32>
    %cst_21 = arith.constant dense<0.000000e+00> : vector<8x8xf32>
    %48 = tpu.matmul %45, %39, %cst_21 {dimension_numbers = #tpu.dot_dimension_numbers<[1], [0], [0], [1], [0, 0, 1, 1], [], []>} : vector<8x8xf32>, vector<8x8xf32>, vector<8x8xf32> -> vector<8x8xf32>
    %49 = tpu.reciprocal %47 : vector<8x1xf32> -> vector<8x1xf32>
    %50 = vector.broadcast %49 : vector<8x1xf32> to vector<8x8xf32>
    %51 = arith.mulf %48, %50 : vector<8x8xf32>
    %52 = vector.extract_strided_slice %17 {offsets = [8, 0], sizes = [8, 32], strides = [1, 1]} : vector<32x32xf32> to vector<8x32xf32>
    %cst_22 = arith.constant dense<0.000000e+00> : vector<8x32xf32>
    %53 = tpu.matmul %51, %52, %cst_22 {dimension_numbers = #tpu.dot_dimension_numbers<[1], [0], [0], [1], [0, 0, 1, 1], [], []>} : vector<8x8xf32>, vector<8x32xf32>, vector<8x32xf32> -> vector<8x32xf32>
    %54 = arith.addf %36, %53 : vector<8x32xf32>
    %55 = vector.extract_strided_slice %14 {offsets = [0, 16], sizes = [8, 8], strides = [1, 1]} : vector<8x32xf32> to vector<8x8xf32>
    %56 = vector.extract_strided_slice %15 {offsets = [0, 16], sizes = [8, 8], strides = [1, 1]} : vector<8x32xf32> to vector<8x8xf32>
    %57 = vector.extract_strided_slice %16 {offsets = [0, 16], sizes = [8, 8], strides = [1, 1]} : vector<8x32xf32> to vector<8x8xf32>
    %cst_23 = arith.constant dense<0.000000e+00> : vector<8x8xf32>
    %58 = tpu.matmul %55, %56, %cst_23 {dimension_numbers = #tpu.dot_dimension_numbers<[1], [1], [0], [0], [0, 0, 1, 0], [], []>} : vector<8x8xf32>, vector<8x8xf32>, vector<8x8xf32> -> vector<8x8xf32>
    %cst_24 = arith.constant dense<0xFF800000> : vector<8xf32>
    %59 = vector.multi_reduction <maximumf>, %58, %cst_24 [1] : vector<8x8xf32> to vector<8xf32>
    %60 = vector.shape_cast %59 : vector<8xf32> to vector<8x1xf32>
    %61 = vector.broadcast %60 : vector<8x1xf32> to vector<8x8xf32>
    %62 = arith.subf %58, %61 : vector<8x8xf32>
    %63 = math.exp %62 : vector<8x8xf32>
    %cst_25 = arith.constant dense<0.000000e+00> : vector<8xf32>
    %64 = vector.multi_reduction <add>, %63, %cst_25 [1] : vector<8x8xf32> to vector<8xf32>
    %65 = vector.shape_cast %64 : vector<8xf32> to vector<8x1xf32>
    %cst_26 = arith.constant dense<0.000000e+00> : vector<8x8xf32>
    %66 = tpu.matmul %63, %57, %cst_26 {dimension_numbers = #tpu.dot_dimension_numbers<[1], [0], [0], [1], [0, 0, 1, 1], [], []>} : vector<8x8xf32>, vector<8x8xf32>, vector<8x8xf32> -> vector<8x8xf32>
    %67 = tpu.reciprocal %65 : vector<8x1xf32> -> vector<8x1xf32>
    %68 = vector.broadcast %67 : vector<8x1xf32> to vector<8x8xf32>
    %69 = arith.mulf %66, %68 : vector<8x8xf32>
    %70 = vector.extract_strided_slice %17 {offsets = [16, 0], sizes = [8, 32], strides = [1, 1]} : vector<32x32xf32> to vector<8x32xf32>
    %cst_27 = arith.constant dense<0.000000e+00> : vector<8x32xf32>
    %71 = tpu.matmul %69, %70, %cst_27 {dimension_numbers = #tpu.dot_dimension_numbers<[1], [0], [0], [1], [0, 0, 1, 1], [], []>} : vector<8x8xf32>, vector<8x32xf32>, vector<8x32xf32> -> vector<8x32xf32>
    %72 = arith.addf %54, %71 : vector<8x32xf32>
    %73 = vector.extract_strided_slice %14 {offsets = [0, 24], sizes = [8, 8], strides = [1, 1]} : vector<8x32xf32> to vector<8x8xf32>
    %74 = vector.extract_strided_slice %15 {offsets = [0, 24], sizes = [8, 8], strides = [1, 1]} : vector<8x32xf32> to vector<8x8xf32>
    %75 = vector.extract_strided_slice %16 {offsets = [0, 24], sizes = [8, 8], strides = [1, 1]} : vector<8x32xf32> to vector<8x8xf32>
    %cst_28 = arith.constant dense<0.000000e+00> : vector<8x8xf32>
    %76 = tpu.matmul %73, %74, %cst_28 {dimension_numbers = #tpu.dot_dimension_numbers<[1], [1], [0], [0], [0, 0, 1, 0], [], []>} : vector<8x8xf32>, vector<8x8xf32>, vector<8x8xf32> -> vector<8x8xf32>
    %cst_29 = arith.constant dense<0xFF800000> : vector<8xf32>
    %77 = vector.multi_reduction <maximumf>, %76, %cst_29 [1] : vector<8x8xf32> to vector<8xf32>
    %78 = vector.shape_cast %77 : vector<8xf32> to vector<8x1xf32>
    %79 = vector.broadcast %78 : vector<8x1xf32> to vector<8x8xf32>
    %80 = arith.subf %76, %79 : vector<8x8xf32>
    %81 = math.exp %80 : vector<8x8xf32>
    %cst_30 = arith.constant dense<0.000000e+00> : vector<8xf32>
    %82 = vector.multi_reduction <add>, %81, %cst_30 [1] : vector<8x8xf32> to vector<8xf32>
    %83 = vector.shape_cast %82 : vector<8xf32> to vector<8x1xf32>
    %cst_31 = arith.constant dense<0.000000e+00> : vector<8x8xf32>
    %84 = tpu.matmul %81, %75, %cst_31 {dimension_numbers = #tpu.dot_dimension_numbers<[1], [0], [0], [1], [0, 0, 1, 1], [], []>} : vector<8x8xf32>, vector<8x8xf32>, vector<8x8xf32> -> vector<8x8xf32>
    %85 = tpu.reciprocal %83 : vector<8x1xf32> -> vector<8x1xf32>
    %86 = vector.broadcast %85 : vector<8x1xf32> to vector<8x8xf32>
    %87 = arith.mulf %84, %86 : vector<8x8xf32>
    %88 = vector.extract_strided_slice %17 {offsets = [24, 0], sizes = [8, 32], strides = [1, 1]} : vector<32x32xf32> to vector<8x32xf32>
    %cst_32 = arith.constant dense<0.000000e+00> : vector<8x32xf32>
    %89 = tpu.matmul %87, %88, %cst_32 {dimension_numbers = #tpu.dot_dimension_numbers<[1], [0], [0], [1], [0, 0, 1, 1], [], []>} : vector<8x8xf32>, vector<8x32xf32>, vector<8x32xf32> -> vector<8x32xf32>
    %90 = arith.addf %72, %89 : vector<8x32xf32>
    %c0_33 = arith.constant 0 : index
    %c0_34 = arith.constant 0 : index
    %91 = vector.load %arg8[%c0_33, %c0_34] : memref<1x32xf32, #tpu.memory_space<vmem>>, vector<1x32xf32>
    %92 = vector.broadcast %91 : vector<1x32xf32> to vector<8x32xf32>
    %93 = arith.addf %90, %92 : vector<8x32xf32>
    %c0_35 = arith.constant 0 : index
    %c0_36 = arith.constant 0 : index
    %c0_37 = arith.constant 0 : index
    %94 = vector.load %arg9[%c0_35, %c0_36, %c0_37] : memref<1x8x32xf32, #tpu.memory_space<vmem>>, vector<1x8x32xf32>
    %95 = vector.shape_cast %94 : vector<1x8x32xf32> to vector<8x32xf32>
    %96 = vector.shape_cast %93 : vector<8x32xf32> to vector<1x8x32xf32>
    tpu.vector_store %arg9[%c0_35, %c0_36, %c0_37], %96 {strides = array<i32>} : memref<1x8x32xf32, #tpu.memory_space<vmem>>, vector<1x8x32xf32>,
    return
  }
  func.func @transform_0(%arg0: i32, %arg1: i32) -> (i32, i32, i32) {
    %c0_i32 = arith.constant 0 : i32
    %c0_i32_0 = arith.constant 0 : i32
    %c0_i32_1 = arith.constant 0 : i32
    return %arg0, %c0_i32, %c0_i32_0 : i32, i32, i32
  }
  func.func @transform_1(%arg0: i32, %arg1: i32) -> (i32, i32) {
    %c0_i32 = arith.constant 0 : i32
    %c0_i32_0 = arith.constant 0 : i32
    %c0_i32_1 = arith.constant 0 : i32
    return %c0_i32, %c0_i32_0 : i32, i32
  }
  func.func @transform_2(%arg0: i32, %arg1: i32) -> (i32, i32) {
    %c0_i32 = arith.constant 0 : i32
    %c0_i32_0 = arith.constant 0 : i32
    %c0_i32_1 = arith.constant 0 : i32
    return %c0_i32, %c0_i32_0 : i32, i32
  }
  func.func @transform_3(%arg0: i32, %arg1: i32) -> (i32, i32) {
    %c0_i32 = arith.constant 0 : i32
    %c0_i32_0 = arith.constant 0 : i32
    %c0_i32_1 = arith.constant 0 : i32
    return %c0_i32, %c0_i32_0 : i32, i32
  }
  func.func @transform_4(%arg0: i32, %arg1: i32) -> (i32, i32) {
    %c0_i32 = arith.constant 0 : i32
    %c0_i32_0 = arith.constant 0 : i32
    %c0_i32_1 = arith.constant 0 : i32
    return %c0_i32, %c0_i32_0 : i32, i32
  }
  func.func @transform_5(%arg0: i32, %arg1: i32) -> (i32, i32) {
    %c0_i32 = arith.constant 0 : i32
    %c0_i32_0 = arith.constant 0 : i32
    %c0_i32_1 = arith.constant 0 : i32
    return %c0_i32, %c0_i32_0 : i32, i32
  }
  func.func @transform_6(%arg0: i32, %arg1: i32) -> (i32, i32) {
    %c0_i32 = arith.constant 0 : i32
    %c0_i32_0 = arith.constant 0 : i32
    %c0_i32_1 = arith.constant 0 : i32
    return %c0_i32, %c0_i32_0 : i32, i32
  }
  func.func @transform_7(%arg0: i32, %arg1: i32) -> (i32, i32, i32) {
    %c0_i32 = arith.constant 0 : i32
    %c0_i32_0 = arith.constant 0 : i32
    return %arg0, %arg1, %c0_i32 : i32, i32, i32
  }
}

</mosaic_0001>

<bundles_post_ra>
// kernel: tpu_custom_call.1
= control target key start
LH: loop header
LB: loop body
LE: loop exit
PB: predicated region body
PF: predicated region fallthrough
CT: control target
= control target key end

     0   :  { %s2556_s0 = inlined_call_operand.hbm [shape: f32[2,8,32], index: 0, kind: input, shape index: {}]   ;;  %s2557_s1 = inlined_call_operand.hbm [shape: f32[32,32], index: 1, kind: input, shape index: {}]   ;;  %s2558_s2 = inlined_call_operand.vmem [shape: f32[1,32], index: 2, kind: input, shape index: {}]   ;;  %s2559_s3 = inlined_call_operand.hbm [shape: f32[32,64], index: 3, kind: input, shape index: {}]   ;;  %s2560_s4 = inlined_call_operand.vmem [shape: f32[1,64], index: 4, kind: input, shape index: {}]   ;;  %s2561_s5 = inlined_call_operand.hbm [shape: f32[32,32], index: 5, kind: input, shape index: {}]   ;;  %s2562_s6 = inlined_call_operand.vmem [shape: f32[1,32], index: 6, kind: input, shape index: {}]   ;;  %s2563_s7 = inlined_call_operand.hbm [shape: f32[2,8,32], index: 7, kind: output, shape index: {}]  }
   0x1   :  { %2571 = sst [smem:[#allocation18_spill]] %s2562_s6 }
   0x2   :  { %2572 = sst [smem:[#allocation19_spill]] %s2563_s7 }
   0x3   :  { %12 = vsyncpa [#allocation4], 0 }
   0x4   :  { %14 = vsyncpa [#allocation4 + $0x1], 0 }
   0x5   :  { %15 = vsyncpa [#allocation7], 0 }
   0x6   :  { %16 = vsyncpa [#allocation10], 0 }
   0x7   :  { %17 = vsyncpa [#allocation5], 0 }
   0x8   :  { %19 = vsyncpa [#allocation5 + $0x1], 0  ;;  %s2177_s24 = smov 0   ;;  %s2179_s25 = smov 0  }
   0x9   :  { %s2181_s26 = smov 0   ;;  %s2183_s27 = smov 0  }
   0xa   :  { %s2185_s28 = smov 0   ;;  %s2187_s29 = smov 0  }
   0xb LB: > { %2573 = sst [smem:[#allocation16_spill]] %s2098_s24  ;;  %s1625_s30 = sadd.s32 4294967295, %s2118_s29   ;;  %s2118_s29 = sphi %s2187_s29, %s25_s29   ;;  %s2114_s28 = sphi %s2185_s28, %s2598_s28   ;;  %s2110_s27 = sphi %s2183_s27, %s2597_s27   ;;  %s2106_s26 = sphi %s2181_s26, %s2596_s26   ;;  %s2102_s25 = sphi %s2179_s25, %s2595_s25   ;;  %s2098_s24 = sphi %s2177_s24, %s2594_s24  }
   0xc   : > { %s1626_s8 = sadd.s32 4294967294, %s2118_s29   ;;  %p57_p0 = scmp.ne.s32.totalorder %s2102_s25, %s2098_s24 }
   0xd   : > { %p2211_p1 = scmp.eq.s32.totalorder %s1625_s30, 0  ;;  %p2215_p2 = scmp.eq.s32.totalorder %s1625_s30, 1 }
   0xe   : > { %p215_p3 = scmp.eq.s32.totalorder %s1626_s8, 1  ;;  %p1627_p5 = scmp.ge.s32.totalorder %s2118_s29, 1 }
   0xf   : > { %s2574_s9 = scalar_select %p2211_p1, 1, 0 }
  0x10   : > { %s2575_s10 = scalar_select %p2215_p2, 1, 0 }
  0x11   : > { %p2221_p4 = por %p2211_p1, %p57_p0  ;;  %p2226_p6 = por %p215_p3, %p57_p0 }
  0x12   : > { %p222_p7 = scmp.lt.s32.totalorder %s2118_s29, 3  ;;  %s2120_s14 = smov [#allocation6]  }
  0x13   : > { %s2576_s11 = scalar_select %p2221_p4, 1, 0 }
  0x14   : > { %s2577_s12 = scalar_select %p2226_p6, 1, 0 }
  0x15   : > { %p2231_p8 = pnand %p1627_p5, %p222_p7  ;;  %s234_s15 = sshll.u32 %s2120_s14, 4  ;;  %s2235_s15 = int_to_ptr.vmem [resolvable:$true] %s234_s15 }
  0x16   : > { %2578 = sst [smem:[#allocation17_spill]] %s2577_s12  ;;  %s2121_s17 = smov [#allocation8]  }
  0x17   : > { %s2579_s13 = scalar_select %p2231_p8, 1, 0 }
  0x18   : > { %p1809_p9 = pneg %p2231_p8  ;;  %s250_s18 = sshll.u32 %s2121_s17, 4  ;;  %s2246_s18 = int_to_ptr.vmem [resolvable:$true] %s250_s18 }
  0x19   : > { %s2122_s19 = smov [#allocation9]   ;;  %s1914_s23 = scalar_lea.hbm %s2557_s1, 512 }
  0x1a   : > { %p2242_p11 = pnand %p1809_p9, %p2211_p1  ;;  %s2248_s20 = sshll.u32 %s2122_s19, 4  ;;  %s267_s20 = int_to_ptr.vmem [resolvable:$true] %s2248_s20 }
  0x1b   : > { %p1915_p12 = scmp.ne.s32.totalorder %s2557_s1, %s1914_s23  ;;  %p1921_p5 = scmp.lt.u32.totalorder %s1914_s23, %s2557_s1 }
  0x1c   : > { %p2258_p13 = pneg %p2242_p11 }
  0x1e   : > { %p1917_p0 = pnand %p2258_p13, %p1915_p12 }
  0x20   : > { %p1918_p3 = pneg %p1917_p0 }
  0x22   : > { %p1923_p7 = pnand %p1921_p5, %p1918_p3 }
  0x24   : > { %1926 = shalt.err (!%p1923_p7)
}
  0x25   : > { %s1927_s21 = scalar_lea.vmem %s2235_s15, 512  ;;  %p1935_p1 = scmp.lt.s32.totalorder %s2235_s15, %s2235_s15 }
  0x26   : > { %p1928_p9 = scmp.ne.s32.totalorder %s2235_s15, %s1927_s21  ;;  %p1936_p4 = scmp.lt.s32.totalorder %s1927_s21, %s1927_s21 }
  0x28   : > { %p1930_p10 = pnand %p1928_p9, %p2258_p13  ;;  %p1937_p12 = por %p1936_p4, %p1935_p1 }
  0x2a   : > { %p1931_p6 = pneg %p1930_p10 }
  0x2c   : > { %p1938_p0 = pnand %p1937_p12, %p1931_p6 }
  0x2e   : > { %1941 = shalt.err (!%p1938_p0)
}
  0x2f   : > { %s2123_s22 = smov 128   ;;  %s2124_s23 = smov 8  }
  0x30   : > { %1812 = dma.hbm_to_vmem [thread:$0]  (!%p2242_p11), %s2557_s1, 512, %s2235_s15, [#allocation7], %s2123_s22, %s2123_s22, %s2124_s23  }
  0x31   : > { %s1942_s21 = scalar_lea.hbm %s2559_s3, 512 }
  0x32   : > { %p1943_p1 = scmp.ne.s32.totalorder %s2559_s3, %s1942_s21  ;;  %p1949_p10 = scmp.lt.u32.totalorder %s1942_s21, %s2559_s3 }
  0x34   : > { %p1945_p4 = pnand %p1943_p1, %p2258_p13 }
  0x36   : > { %p1946_p6 = pneg %p1945_p4 }
  0x38   : > { %p1951_p3 = pnand %p1949_p10, %p1946_p6 }
  0x3a   : > { %1954 = shalt.err (!%p1951_p3)
}
  0x3b   : > { %s1955_s15 = scalar_lea.vmem %s2246_s18, 512  ;;  %p1963_p12 = scmp.lt.s32.totalorder %s2246_s18, %s2246_s18 }
  0x3c   : > { %p1956_p5 = scmp.ne.s32.totalorder %s2246_s18, %s1955_s15  ;;  %p1964_p0 = scmp.lt.s32.totalorder %s1955_s15, %s1955_s15 }
  0x3e   : > { %p1958_p7 = pnand %p1956_p5, %p2258_p13  ;;  %p1965_p1 = por %p1964_p0, %p1963_p12 }
  0x40   : > { %p1959_p9 = pneg %p1958_p7 }
  0x42   : > { %p1966_p4 = pnand %p1965_p1, %p1959_p9 }
  0x44   : > { %1969 = shalt.err (!%p1966_p4)
}
  0x45   : > { %1815 = dma.hbm_to_vmem [thread:$0]  (!%p2242_p11), %s2559_s3, 512, %s2246_s18, [#allocation7], %s2123_s22, %s2123_s22, %s2124_s23  }
  0x46   : > { %s1970_s30 = scalar_lea.hbm %s2561_s5, 512 }
  0x47   : > { %p1971_p6 = scmp.ne.s32.totalorder %s2561_s5, %s1970_s30  ;;  %p1977_p5 = scmp.lt.u32.totalorder %s1970_s30, %s2561_s5 }
  0x49   : > { %p1973_p10 = pnand %p1971_p6, %p2258_p13 }
  0x4b   : > { %p1974_p3 = pneg %p1973_p10 }
  0x4d   : > { %p1979_p7 = pnand %p1977_p5, %p1974_p3 }
  0x4f   : > { %1982 = shalt.err (!%p1979_p7)
}
  0x50   : > { %s1983_s15 = scalar_lea.vmem %s267_s20, 512  ;;  %p1991_p1 = scmp.lt.s32.totalorder %s267_s20, %s267_s20 }
  0x51   : > { %p1984_p9 = scmp.ne.s32.totalorder %s267_s20, %s1983_s15  ;;  %p1992_p4 = scmp.lt.s32.totalorder %s1983_s15, %s1983_s15 }
  0x53   : > { %p1986_p12 = pnand %p1984_p9, %p2258_p13  ;;  %p1993_p8 = por %p1992_p4, %p1991_p1 }
  0x55   : > { %p1987_p0 = pneg %p1986_p12 }
  0x57   : > { %p1994_p2 = pnand %p1993_p8, %p1987_p0 }
  0x59   : > { %1997 = shalt.err (!%p1994_p2)
}
  0x5a   : > { %1818 = dma.hbm_to_vmem [thread:$0]  (!%p2242_p11), %s2561_s5, 512, %s267_s20, [#allocation10], %s2123_s22, %s2123_s22, %s2124_s23  }
  0x5b   : > { %s44_s14 = sadd.s32 1, %s2106_s26  ;;  %s37_s16 = sadd.s32 1, %s2114_s28 }
  0x5c   : > { %p51_p2 = scmp.ne.s32.totalorder %s2106_s26, %s2102_s25  ;;  %p39_p8 = scmp.ge.s32.totalorder %s37_s16, 2 }
  0x5d   : > { %p52_p13 = scmp.eq.s32.totalorder %s2118_s29, 0  ;;  %p2582_p6 = scmp.ne.s32.totalorder %s2575_s10, 0 }
  0x5e   : > { %p1830_p3 = scmp.lt.s32.totalorder %s2118_s29, 2  ;;  %s2600_s16 = smov (%p39_p8, %s37_s16), 0 }
  0x5f   : > { %p2337_p10 = por %p2582_p6, %p51_p2  ;;  %p53_p5 = por %p52_p13, %p51_p2 }
  0x60   : > { %s283_s24 = sand.u32 1, %s2106_s26   ;;  %s41_s12 = ssub.s32 %s2114_s28, %s2600_s16 }
  0x61   : > { %p42_p7 = scmp.eq.s32.totalorder %s41_s12, 0  ;;  %s1632_s20 = sshll.u32 %s283_s24, 3 }
  0x62   : > { %s1633_s22 = sshll.u32 %s2114_s28, 7  ;;  %s287_s17 = scalar_lea.vmem [#allocation3], %s1632_s20 }
  0x63   : > { %s2349_s23 = scalar_select %p42_p7, %s2106_s26, %s44_s14  }
  0x64   : > { %s2354_s10 = scalar_lea.hbm %s2556_s0, %s1633_s22  ;;  %s294_s19 = sshll.u32 %s287_s17, 4  ;;  %s2356_s19 = int_to_ptr.vmem [resolvable:$true] %s294_s19 }
  0x65   : > { %p2360_p11 = pnand %p1830_p3, %p53_p5  ;;  %s284_s15 = scalar_lea.sflag [#allocation4], %s283_s24 }
  0x66   : > { %s1998_s18 = scalar_lea.hbm %s2354_s10, 128  ;;  %s2003_s12 = scalar_lea.hbm %s2556_s0, 256 }
  0x67   : > { %p1999_p9 = scmp.ne.s32.totalorder %s2354_s10, %s1998_s18  ;;  %p2000_p12 = pneg %p2360_p11 }
  0x68   : > { %p2004_p4 = scmp.lt.u32.totalorder %s2354_s10, %s2556_s0  ;;  %p2005_p2 = scmp.lt.u32.totalorder %s2003_s12, %s1998_s18 }
  0x69   : > { %p2001_p0 = pnand %p2000_p12, %p1999_p9  ;;  %p2007_p13 = scmp.lt.u32.totalorder %s1998_s18, %s2354_s10 }
  0x6a   : > { %p2006_p8 = por %p2005_p2, %p2004_p4 }
  0x6b   : > { %p2002_p1 = pneg %p2001_p0 }
  0x6c   : > { %p2008_p6 = por %p2007_p13, %p2006_p8 }
  0x6e   : > { %p2009_p3 = pnand %p2008_p6, %p2002_p1 }
  0x70   : > { %2012 = shalt.err (!%p2009_p3)
}
  0x71   : > { %s2013_s24 = scalar_lea.vmem %s2356_s19, 128  ;;  %s2125_s30 = smov [#allocation3]  }
  0x72   : > { %p2014_p5 = scmp.ne.s32.totalorder %s2356_s19, %s2013_s24  ;;  %s2018_s8 = sshll.u32 %s2125_s30, 4  ;;  %s2019_s8 = int_to_ptr.vmem [resolvable:$false] %s2018_s8 }
  0x73   : > { %s2020_s17 = scalar_lea.vmem %s2019_s8, 256  ;;  %p2021_p0 = scmp.lt.s32.totalorder %s2356_s19, %s2019_s8 }
  0x74   : > { %p2016_p7 = pnand %p2014_p5, %p2000_p12  ;;  %p2022_p4 = scmp.lt.s32.totalorder %s2020_s17, %s2013_s24 }
  0x76   : > { %p2017_p9 = pneg %p2016_p7  ;;  %p2023_p2 = por %p2022_p4, %p2021_p0 }
  0x78   : > { %p2024_p8 = pnand %p2023_p2, %p2017_p9 }
  0x7a   : > { %2027 = shalt.err (!%p2024_p8)
}
  0x7b   : > { %1822 = dma.hbm_to_vmem [thread:$0]  (!%p2360_p11), %s2354_s10, 128, %s2356_s19, %s284_s15  }
  0x7c   : > { %p2585_p1 = scmp.ne.s32.totalorder %s2579_s13, 0 }
  0x7d   : > { %s2392_s18 = sand.u32 (!%p2585_p1), 1, %s2102_s25   ;;  %p2586_p12 = scmp.ne.s32.totalorder (!%p2585_p1), %s2576_s11, 0 }
  0x7e   : > { %303 = sbr.rel (%p2585_p1) target bundleno = 2267 (0x8db), region = 48  ;;  %s1635_s6 = sshll.u32 (!%p2585_p1), %s2392_s18, 3 }
  0x7f   : > { %s306_s14 = scalar_lea.sflag (!%p2585_p1), [#allocation4], %s2392_s18  ;;  %s2398_s12 = scalar_lea.vmem (!%p2585_p1), [#allocation3], %s1635_s6 }
  0x85   : > { %2081 = dma.done.wait (%p2586_p12), %s306_s14, 128  }
  0x86   : > { %2083 = vsyncadd (%p2586_p12), %s306_s14, 4294967168  ;;  %p2587_p11 = scmp.ne.s32.totalorder %s2574_s9, 0 }
  0x88   : > { %2085 = dma.done.wait (%p2587_p11), [#allocation7], 1024  }
  0x89   : > { %2087 = vsyncadd (%p2587_p11), [#allocation7], 4294966272 }
  0x8a   : > { %2089 = dma.done.wait (%p2587_p11), [#allocation10], 512  }
  0x8b   : > { %2091 = vsyncadd (%p2587_p11), [#allocation10], 4294966784  ;;  %v2126_v0 = vmov 0.0|0.0   ;;  %vm2127_vm0 = vmmov 0   ;;  %v2128_v1 = vmov 0.0   ;;  %v357_v2 = vld [vmem:[#allocation8] sm:$0xff] }
  0x8c   : > { %1781 = vmatprep.subr.bf16.mxu0 %v2126_v0  ;;  %1707 = vmatprep.mubr.msk.f32.mxu0 %vm2127_vm0, %v2128_v1  ;;  %v358_v3 = vld [vmem:[#allocation8 + $0x8] sm:$0xff]  ;;  %v359_v4 = vld [vmem:[#allocation8 + $0x10] sm:$0xff]  ;;  %v360_v6 = vld [vmem:[#allocation8 + $0x18] sm:$0xff]  ;;  %vm368_vm1 = vcmask 261120   ;;  %vm442_vm2 = vcmask 523264   ;;  %vm538_vm3 = vcmask 64512  }
  0x8d   : > { %1787 = vmatprep.subr.bf16.mxu1 %v2126_v0  ;;  %1718 = vmatprep.mubr.msk.f32.mxu1 %vm2127_vm0, %v2128_v1  ;;  %v1782_v5 = vpack.c.bf16 %v358_v3, %v357_v2  ;;  %v447_v7 = vld [vmem:[#allocation6] sm:$0xff]  ;;  %v448_v8 = vld [vmem:[#allocation6 + $0x8] sm:$0xff]  ;;  %v449_v9 = vld [vmem:[#allocation6 + $0x10] sm:$0xff]  ;;  %v1785_v11 = vpack.c.bf16 %v360_v6, %v359_v4  ;;  %s2129_s19 = smov 120   ;;  %s2130_s21 = smov 96  }
  0x8e   : > { %v450_v10 = vld [vmem:[#allocation6 + $0x18] sm:$0xff]  ;;  %v1788_v12 = vpack.c.bf16 %v448_v8, %v447_v7  ;;  %v1640_v15 = vld [vmem:[%s2560_s4] ss:$0 sm:$0xff]  ;;  %s2131_s15 = smov 88   ;;  %s2132_s20 = smov 112   ;;  %v534_v43 = vld [vmem:[#allocation9] sm:$0xff] }
  0x8f   : > { %1783 = vmatpush3.bf16.msra.mxu0 %v1782_v5  ;;  %v1791_v13 = vpack.c.bf16 %v450_v10, %v449_v9  ;;  %v356_v14 = vld [vmem:[%s2398_s12] sm:$0xff]  ;;  %v1642_v20 = vld [vmem:[%s2558_s2] ss:$0 sm:$0xff]  ;;  %s2133_s22 = smov 104   ;;  %s2134_s24 = smov 80  }
  0x90   : > { %1784 = vmatprep.subr.bf16.mxu0 %v2126_v0  ;;  %1789 = vmatpush3.bf16.msra.mxu1 %v1788_v12  ;;  %v535_v46 = vld [vmem:[#allocation9 + $0x8] sm:$0xff]  ;;  %s2135_s30 = smov 72   ;;  %v536_v12 = vld [vmem:[#allocation9 + $0x10] sm:$0xff]  ;;  %s2588_s14 = sld [smem:[#allocation18_spill]] }
  0x91   : > { %1790 = vmatprep.subr.bf16.mxu1 %v2126_v0  ;;  %s1662_s12 = sshll.u32 %s2110_s27, 7  ;;  %s351_s9 = scalar_lea.vmem [#allocation11], %s1635_s6 }
  0x92   : > { %s1515_s11 = sshll.u32 %s351_s9, 4  ;;  %s2136_s6 = smov [#allocation11]   ;;  %s2508_s11 = int_to_ptr.vmem [resolvable:$true] %s1515_s11 }
  0x93   : > { %1786 = vmatpush3.bf16.msra.mxu0 %v1785_v11  ;;  %s2028_s27 = scalar_lea.vmem %s2508_s11, 128 }
  0x94   : > { %1721 = vmatprep.subr.mxu0 %v2128_v1  ;;  %1792 = vmatpush3.bf16.msra.mxu1 %v1791_v13  ;;  %p2029_p13 = scmp.ne.s32.totalorder %s2508_s11, %s2028_s27 }
  0x95   : > { %1726 = vmatprep.subr.mxu1 %v2128_v1 }
  0x96   : > { %1708 = vmatmul.mubr.msk.f32.vlgmr.msra.gmra.mrb[0].mxu0 %vm368_vm1, %v356_v14  ;;  %p2030_p6 = pnand %p2029_p13, %p2337_p10 }
  0x97   : > { %1723 = vmatprep.mubr.msk.f32.mxu0 %vm2127_vm0, %v2128_v1  ;;  %1719 = vmatmul.mubr.msk.f32.vlgmr.msra.gmra.mrb[0].mxu1 %vm368_vm1, %v356_v14 }
  0x98   : > { %1728 = vmatprep.mubr.msk.f32.mxu1 %vm2127_vm0, %v2128_v1  ;;  %p2031_p3 = pneg %p2030_p6 }
 0x169   : > { %v438_v16 = vpop.f32.mrb[0].mxu0 }
 0x16a   : > { %v439_v17 = vadd.f32 %v1640_v15, %v438_v16  ;;  %v1709_v18 = vpop.f32.mrb[1].mxu0  ;;  %v528_v19 = vpop.f32.mrb[0].mxu1 }
 0x16b   : > { %v1720_v21 = vpop.f32.mrb[1].mxu1  ;;  %v529_v22 = vadd.f32 %v1642_v20, %v528_v19 }
 0x16c   : > { %443 = vst.msk [vmem:[#allocation2] sm:$0xff] %vm442_vm2, %v439_v17 }
 0x16d   : > { %v532_v23 = vmul.f32 0.35355338, %v529_v22 }
 0x173   : > { %v2431_v24 = vld [vmem:[#allocation2] sm:$0xff] }
 0x174   : > { %704 = vrot.lane.b32.xlu0 %v2431_v24, %s2129_s19  ;;  %1722 = vmatpush3.xpose.msk.msra.mxu0 %vm538_vm3, %v2431_v24 }
 0x175   : > { %1731 = vmatprep.subr.mxu0 %v2128_v1 }
 0x177   : > { %1724 = vmatmul.mubr.msk.f32.vlgmr.msra.gmra.mrb[2].mxu0 %vm538_vm3, %v532_v23 }
 0x178   : > { %702 = vrot.lane.b32.xlu0 %v532_v23, %s2129_s19  ;;  %1733 = vmatprep.mubr.msk.f32.mxu0 %vm2127_vm0, %v2128_v1  ;;  %s2589_s19 = sld [smem:[#allocation19_spill]] }
 0x17c   : > { %624 = vrot.lane.b32.xlu0 %v2431_v24, %s2130_s21 }
 0x17e   : > { %s2506_s21 = scalar_lea.hbm %s2589_s19, %s1662_s12 }
 0x1e6   : > { %v705_v25 = vpop.permute.xlu0 %704 }
 0x1e7   : > { %1732 = vmatpush3.xpose.msk.msra.mxu0 %vm538_vm3, %v705_v25 }
 0x1e8   : > { %1741 = vmatprep.subr.mxu0 %v2128_v1 }
 0x1ea   : > { %v703_v26 = vpop.permute.xlu0 %702 }
 0x1eb   : > { %1734 = vmatmul.mubr.msk.f32.vlgmr.msra.gmra.mrb[4].mxu0 %vm538_vm3, %v703_v26 }
 0x1ec   : > { %1743 = vmatprep.mubr.msk.f32.mxu0 %vm2127_vm0, %v2128_v1  ;;  %1742 = vmatpush3.msra.mxu0 %v535_v46 }
 0x1ed   : > { %1751 = vmatprep.subr.mxu0 %v2128_v1 }
 0x1ee   : > { %v625_v27 = vpop.permute.xlu0 %624 }
 0x1ef   : > { %1727 = vmatpush3.msra.mxu1 %v625_v27  ;;  %v537_v27 = vld [vmem:[#allocation9 + $0x18] sm:$0xff] }
 0x1f0   : > { %1736 = vmatprep.subr.mxu1 %v2128_v1 }
 0x24a   : > { %v611_v28 = vpop.f32.mrb[2].mxu0 }
 0x24b   : > { %v1725_v29 = vpop.f32.mrb[3].mxu0  ;;  %v615_v30 = vsel %vm538_vm3, %v611_v28, -inf }
 0x24c   : > { %616 = vmax.xlane.f32.xlu1 %v615_v30 }
 0x2be   : > { %v776_v31 = vpop.f32.mrb[4].mxu0 }
 0x2bf   : > { %v1735_v32 = vpop.f32.mrb[5].mxu0  ;;  %v780_v33 = vsel %vm538_vm3, %v776_v31, -inf }
 0x2c0   : > { %781 = vmax.xlane.f32.xlu1 %v780_v33 }
 0x2d1   : > { %789 = vrot.lane.b32.xlu1 %v2431_v24, %s2131_s15  ;;  %s1501_s15 = scalar_lea.sflag [#allocation5], %s2392_s18 }
 0x2d5   : > { %1015 = vrot.lane.b32.xlu1 %v2431_v24, %s2132_s20 }
 0x2d9   : > { %v617_v34 = vpop.xlane.xlu1 %616  ;;  %1013 = vrot.lane.b32.xlu1 %v532_v23, %s2132_s20  ;;  %s2032_s20 = sshll.u32 %s2136_s6, 4  ;;  %s2033_s20 = int_to_ptr.vmem [resolvable:$false] %s2032_s20 }
 0x2da   : > { %v618_v35 = vsub.f32 %v611_v28, %v617_v34  ;;  %p2035_p5 = scmp.lt.s32.totalorder %s2508_s11, %s2033_s20 }
 0x2dc   : > { %v619_v36 = vmul.f32 1.442695, %v618_v35 }
 0x2de   : > { %1898 = vpow2.f32 %v619_v36  ;;  %v1660_v36 = vld [vmem:[%s2588_s14] ss:$0 sm:$0xff] }
 0x2e8   : > { %v1899_v37 = vpop.eup %1898 }
 0x2e9   : > { %1729 = vmatmul.mubr.msk.f32.vlgmr.msra.gmra.mrb[2].mxu1 %vm538_vm3, %v1899_v37  ;;  %v621_v38 = vsel %vm538_vm3, %v1899_v37, 0.0 }
 0x2ea   : > { %1738 = vmatprep.mubr.msk.f32.mxu1 %vm2127_vm0, %v2128_v1 }
 0x2fd   : > { %622 = vadd.xlane.f32.xlu1 %v621_v38 }
 0x30e   : > { %1252 = vrot.lane.b32.xlu1 %v532_v23, %s2133_s22 }
 0x34d   : > { %v782_v39 = vpop.xlane.xlu1 %781 }
 0x34e   : > { %v783_v40 = vsub.f32 %v776_v31, %v782_v39 }
 0x350   : > { %v784_v41 = vmul.f32 1.442695, %v783_v40 }
 0x351   : > { %v790_v42 = vpop.permute.xlu1 %789 }
 0x352   : > { %1900 = vpow2.f32 %v784_v41  ;;  %1737 = vmatpush3.msra.mxu1 %v790_v42 }
 0x353   : > { %1746 = vmatprep.subr.mxu1 %v2128_v1 }
 0x355   : > { %v1016_v47 = vpop.permute.xlu1 %1015 }
 0x359   : > { %v1014_v48 = vpop.permute.xlu1 %1013 }
 0x35c   : > { %v1901_v44 = vpop.eup %1900 }
 0x35d   : > { %1739 = vmatmul.mubr.msk.f32.vlgmr.msra.gmra.mrb[4].mxu1 %vm538_vm3, %v1901_v44  ;;  %v786_v45 = vsel %vm538_vm3, %v1901_v44, 0.0 }
 0x35e   : > { %787 = vadd.xlane.f32.xlu0 %v786_v45  ;;  %1747 = vmatpush3.msra.mxu1 %v534_v43 }
 0x35f   : > { %1748 = vmatprep.mubr.msk.f32.mxu1 %vm2127_vm0, %v2128_v1  ;;  %1756 = vmatprep.subr.mxu1 %v2128_v1 }
 0x374   : > { %1100 = vrot.lane.b32.xlu0 %v2431_v24, %s2134_s24 }
 0x38a   : > { %v623_v49 = vpop.xlane.xlu1 %622 }
 0x38b   : > { %1902 = vrcp.f32 %v623_v49 }
 0x38e   : > { %v1253_v11 = vpop.permute.xlu1 %1252 }
 0x395   : > { %v1903_v50 = vpop.eup %1902 }
 0x3bc   : > { %v696_v51 = vpop.f32.mrb[2].mxu1 }
 0x3bd   : > { %v701_v52 = vmul.f32 %v1903_v50, %v696_v51  ;;  %v1730_v53 = vpop.f32.mrb[3].mxu1 }
 0x3bf   : > { %1749 = vmatmul.mubr.msk.f32.vlgmr.msra.gmra.mrb[6].mxu1 %vm538_vm3, %v701_v52 }
 0x3c0   : > { %1758 = vmatprep.mubr.msk.f32.mxu1 %vm2127_vm0, %v2128_v1 }
 0x3eb   : > { %v788_v54 = vpop.xlane.xlu0 %787 }
 0x3ec   : > { %1904 = vrcp.f32 %v788_v54 }
 0x3ef   : > { %v1101_v55 = vpop.permute.xlu0 %1100 }
 0x3f0   : > { %1757 = vmatpush3.msra.mxu1 %v1101_v55 }
 0x3f1   : > { %1766 = vmatprep.subr.mxu1 %v2128_v1 }
 0x3f6   : > { %v1905_v56 = vpop.eup %1904 }
 0x430   : > { %v861_v57 = vpop.f32.mrb[4].mxu1 }
 0x431   : > { %v866_v58 = vmul.f32 %v1905_v56, %v861_v57  ;;  %v1740_v59 = vpop.f32.mrb[5].mxu1 }
 0x433   : > { %1744 = vmatmul.mubr.msk.f32.vlgmr.msra.gmra.mrb[6].mxu0 %vm538_vm3, %v866_v58 }
 0x434   : > { %1752 = vmatpush3.xpose.msk.msra.mxu0 %vm538_vm3, %v1016_v47  ;;  %1753 = vmatprep.mubr.msk.f32.mxu0 %vm2127_vm0, %v2128_v1 }
 0x435   : > { %1761 = vmatprep.subr.mxu0 %v2128_v1 }
 0x437   : > { %1754 = vmatmul.mubr.msk.f32.vlgmr.msra.gmra.mrb[8].mxu0 %vm538_vm3, %v1014_v48 }
 0x438   : > { %1763 = vmatprep.mubr.msk.f32.mxu0 %vm2127_vm0, %v2128_v1  ;;  %1762 = vmatpush3.msra.mxu0 %v536_v12 }
 0x439   : > { %1771 = vmatprep.subr.mxu0 %v2128_v1 }
 0x492   : > { %v1009_v60 = vpop.f32.mrb[6].mxu1 }
 0x493   : > { %v1750_v61 = vpop.f32.mrb[7].mxu1 }
 0x506   : > { %v936_v62 = vpop.f32.mrb[6].mxu0 }
 0x507   : > { %v1010_v63 = vadd.f32 %v1009_v60, %v936_v62  ;;  %v1745_v0 = vpop.f32.mrb[7].mxu0 }
 0x50a   : > { %v1087_v2 = vpop.f32.mrb[8].mxu0 }
 0x50b   : > { %v1755_v3 = vpop.f32.mrb[9].mxu0  ;;  %v1091_v4 = vsel %vm538_vm3, %v1087_v2, -inf }
 0x50c   : > { %1092 = vmax.xlane.f32.xlu0 %v1091_v4 }
 0x522   : > { %1254 = vrot.lane.b32.xlu0 %v2431_v24, %s2133_s22  ;;  %s2034_s22 = scalar_lea.vmem %s2033_s20, 256 }
 0x523   : > { %p2036_p7 = scmp.lt.s32.totalorder %s2034_s22, %s2028_s27 }
 0x525   : > { %p2037_p9 = por %p2036_p7, %p2035_p5 }
 0x527   : > { %p2038_p0 = pnand %p2037_p9, %p2031_p3 }
 0x599   : > { %v1093_v5 = vpop.xlane.xlu0 %1092 }
 0x59a   : > { %v1094_v6 = vsub.f32 %v1087_v2, %v1093_v5 }
 0x59c   : > { %v1095_v7 = vmul.f32 1.442695, %v1094_v6 }
 0x59d   : > { %v1255_v9 = vpop.permute.xlu0 %1254 }
 0x59e   : > { %1906 = vpow2.f32 %v1095_v7 }
 0x5a8   : > { %v1907_v8 = vpop.eup %1906 }
 0x5a9   : > { %1759 = vmatmul.mubr.msk.f32.vlgmr.msra.gmra.mrb[8].mxu1 %vm538_vm3, %v1907_v8  ;;  %v1097_v10 = vsel %vm538_vm3, %v1907_v8, 0.0 }
 0x5aa   : > { %1767 = vmatpush3.xpose.msk.msra.mxu1 %vm538_vm3, %v1255_v9  ;;  %1098 = vadd.xlane.f32.xlu0 %v1097_v10 }
 0x5ab   : > { %1768 = vmatprep.mubr.msk.f32.mxu1 %vm2127_vm0, %v2128_v1  ;;  %1776 = vmatprep.subr.mxu1 %v2128_v1 }
 0x5ad   : > { %1769 = vmatmul.mubr.msk.f32.vlgmr.msra.gmra.mrb[10].mxu1 %vm538_vm3, %v1253_v11 }
 0x5ae   : > { %1778 = vmatprep.mubr.msk.f32.mxu1 %vm2127_vm0, %v2128_v1  ;;  %1777 = vmatpush3.msra.mxu1 %v537_v27 }
 0x5c0   : > { %1339 = vrot.lane.b32.xlu0 %v2431_v24, %s2135_s30 }
 0x637   : > { %v1099_v13 = vpop.xlane.xlu0 %1098 }
 0x638   : > { %1908 = vrcp.f32 %v1099_v13 }
 0x63b   : > { %v1340_v18 = vpop.permute.xlu0 %1339 }
 0x642   : > { %v1909_v14 = vpop.eup %1908 }
 0x67c   : > { %v1172_v15 = vpop.f32.mrb[8].mxu1 }
 0x67d   : > { %v1177_v16 = vmul.f32 %v1909_v14, %v1172_v15  ;;  %v1760_v17 = vpop.f32.mrb[9].mxu1 }
 0x67f   : > { %1764 = vmatmul.mubr.msk.f32.vlgmr.msra.gmra.mrb[10].mxu0 %vm538_vm3, %v1177_v16 }
 0x680   : > { %1772 = vmatpush3.msra.mxu0 %v1340_v18  ;;  %v1326_v19 = vpop.f32.mrb[10].mxu1  ;;  %1773 = vmatprep.mubr.msk.f32.mxu0 %vm2127_vm0, %v2128_v1 }
 0x681   : > { %v1770_v20 = vpop.f32.mrb[11].mxu1  ;;  %v1330_v21 = vsel %vm538_vm3, %v1326_v19, -inf }
 0x682   : > { %1331 = vmax.xlane.f32.xlu1 %v1330_v21 }
 0x70f   : > { %v1332_v22 = vpop.xlane.xlu1 %1331 }
 0x710   : > { %v1333_v23 = vsub.f32 %v1326_v19, %v1332_v22 }
 0x712   : > { %v1334_v24 = vmul.f32 1.442695, %v1333_v23 }
 0x714   : > { %1910 = vpow2.f32 %v1334_v24 }
 0x71e   : > { %v1911_v25 = vpop.eup %1910 }
 0x71f   : > { %1774 = vmatmul.mubr.msk.f32.vlgmr.msra.gmra.mrb[12].mxu0 %vm538_vm3, %v1911_v25  ;;  %v1336_v26 = vsel %vm538_vm3, %v1911_v25, 0.0 }
 0x720   : > { %1337 = vadd.xlane.f32.xlu1 %v1336_v26 }
 0x752   : > { %v1247_v28 = vpop.f32.mrb[10].mxu0 }
 0x753   : > { %v1251_v1 = vadd.f32 %v1247_v28, %v1010_v63  ;;  %v1765_v29 = vpop.f32.mrb[11].mxu0 }
 0x7ad   : > { %v1338_v30 = vpop.xlane.xlu1 %1337 }
 0x7ae   : > { %1912 = vrcp.f32 %v1338_v30 }
 0x7b8   : > { %v1913_v31 = vpop.eup %1912 }
 0x7f2   : > { %v1411_v32 = vpop.f32.mrb[12].mxu0 }
 0x7f3   : > { %v1416_v33 = vmul.f32 %v1913_v31, %v1411_v32  ;;  %v1775_v34 = vpop.f32.mrb[13].mxu0 }
 0x7f5   : > { %1779 = vmatmul.mubr.msk.f32.vlgmr.msra.gmra.mrb[12].mxu1 %vm538_vm3, %v1416_v33 }
 0x8c8   : > { %v1486_v35 = vpop.f32.mrb[12].mxu1 }
 0x8c9   : > { %v1490_v37 = vadd.f32 %v1486_v35, %v1251_v1  ;;  %v1780_v38 = vpop.f32.mrb[13].mxu1 }
 0x8cb   : > { %v1498_v39 = vadd.f32 %v1660_v36, %v1490_v37 }
 0x8cd   : > { %1499 = vst.msk [vmem:[%s351_s9] sm:$0xff] %vm368_vm1, %v1498_v39 }
 0x8ce   : > { %2041 = shalt.err (!%p2038_p0)
}
 0x8cf   : > { %s2042_s18 = scalar_lea.hbm %s2506_s21, 128  ;;  %s2046_s8 = scalar_lea.hbm %s2589_s19, 256 }
 0x8d0   : > { %p2043_p4 = scmp.ne.s32.totalorder %s2506_s21, %s2042_s18  ;;  %p2047_p1 = scmp.lt.u32.totalorder %s2506_s21, %s2589_s19 }
 0x8d1   : > { %p2048_p12 = scmp.lt.u32.totalorder %s2046_s8, %s2042_s18  ;;  %p2050_p13 = scmp.lt.u32.totalorder %s2042_s18, %s2506_s21 }
 0x8d2   : > { %p2044_p2 = pnand %p2043_p4, %p2337_p10 }
 0x8d3   : > { %p2049_p11 = por %p2048_p12, %p2047_p1 }
 0x8d4   : > { %p2045_p8 = pneg %p2044_p2 }
 0x8d5   : > { %p2051_p6 = por %p2050_p13, %p2049_p11 }
 0x8d7   : > { %p2052_p3 = pnand %p2051_p6, %p2045_p8 }
 0x8d9   : > { %2055 = shalt.err (!%p2052_p3)
}
 0x8da   : > { %1807 = dma.vmem_to_hbm [thread:$0]  (%p2337_p10), %s2508_s11, 128, %s2506_s21, %s1501_s15  }
 0x8db PF: > { %s2590_s12 = sld [smem:[#allocation16_spill]]  ;;  %s2591_s9 = sld [smem:[#allocation17_spill]] }
 0x8dc   : > { %p2593_p7 = scmp.ge.s32.totalorder %s2118_s29, 2 }
 0x8e1   : > { %s1527_s13 = sand.u32 1, %s2590_s12   ;;  %p2592_p5 = scmp.ne.s32.totalorder %s2591_s9, 0 }
 0x8e2   : > { %s1528_s10 = scalar_lea.sflag [#allocation5], %s1527_s13 }
 0x8e3   : > { %p1824_p9 = pnand %p2593_p7, %p2592_p5 }
 0x8e5   : > { %2093 = dma.done.wait (!%p1824_p9), %s1528_s10, 128  }
 0x8e6   : > { %2095 = vsyncadd (!%p1824_p9), %s1528_s10, 4294967168  ;;  %s25_s29 = sadd.s32 1, %s2118_s29   ;;  %s2594_s24 = smov %s2102_s25 }
 0x8e7   : > { %p22_p0 = scmp.ge.s32.totalorder %s25_s29, 4   ;;  %s2595_s25 = smov %s2106_s26 }
 0x8e8   : > { %s2596_s26 = smov %s2349_s23  ;;  %s2597_s27 = smov %s2114_s28 }
 0x8e9   : > { %s2598_s28 = smov %s2600_s16  ;;  %24 = sbr.rel (!%p22_p0) target bundleno = 11 (0xb), region = 110 }
 0x8f0   :  { %1533 = vsyncpa [#allocation4], 1 }
 0x8f1   :  { %1535 = vsyncpa [#allocation4 + $0x1], 1 }
 0x8f2   :  { %1536 = vsyncpa [#allocation7], 1 }
 0x8f3   :  { %1537 = vsyncpa [#allocation10], 1 }
 0x8f4   :  { %1538 = vsyncpa [#allocation5], 1 }
 0x8f5   :  { %1540 = vsyncpa [#allocation5 + $0x1], 1 }

</bundles_post_ra>
